<compile_context>
chip_gen: v6e
topology: v6e:2x2x1
jax: 0.10.0
libtpu: 0.0.40
codegen_flags: <defaults>
</compile_context>

<pallas_src>
import jax
import jax.numpy as jnp
import numpy as np
from jax.experimental import pallas as pl
from jax.experimental.pallas import tpu as pltpu


def _round_up(x, m):
    return (x + m - 1) // m * m


# ----------------------------- Pallas kernel ------------------------------ #
def _make_kernel(n):
    """n = padded (lane-dense) layer width, a multiple of 128."""

    def kernel(state_ref, ws_ref, wh_ref, b_ref, out_ref):
        s = state_ref[...]                               # (TB, DP) bf16

        # One wide MXU pass over all four state-side weight blocks:
        # sp[:, li*n:(li+1)*n] == state @ Ws_li  (f32 accumulate).
        sp = jnp.dot(s, ws_ref[...],
                     preferred_element_type=jnp.float32)  # (TB, 4n) f32

        def bias(i):          # (1, n) f32, static 1-row slice (broadcasts)
            return b_ref[pl.ds(i, 1), :]

        def wh(i):            # (n, n) bf16, static row-block slice
            return wh_ref[pl.ds(i * n, n), :]

        # layer_1: relu(state @ W1 + b1)
        x = jnp.maximum(sp[:, 0:n] + bias(0), 0.0)

        # layers 2..4: relu(cat([x, state]) @ W + b) == relu(x@Wh + s@Ws + b)
        for li in (1, 2, 3):
            h = jnp.dot(x.astype(jnp.bfloat16), wh(li - 1),
                        preferred_element_type=jnp.float32)
            x = jnp.maximum(h + sp[:, li * n:(li + 1) * n] + bias(li), 0.0)

        # out_layer (no activation) -> lane-dense (TB, n) bf16 store
        o = jnp.dot(x.astype(jnp.bfloat16), wh(3),
                    preferred_element_type=jnp.float32) + bias(4)
        out_ref[...] = o.astype(out_ref.dtype)

    return kernel


# ------------------------------ wrapper ----------------------------------- #
def d2rl_actor_forward(state, packed):
    input_dim, hidden_dim, output_dim, DP, N = packed["dims"]
    ws, wh, b = packed["ws"], packed["wh"], packed["b"]
    B = state.shape[0]

    # Batch tiling:
    #   * tiny batch  -> one step of the whole (padded) batch
    #   * moderate    -> exactly 2 steps so v7x's two TensorCores both work
    #   * large       -> 2048-row tiles (per-step overhead amortized, VMEM ok)
    B_pad = _round_up(B, 16)                     # bf16 sublane alignment
    if B_pad <= 256:
        TB = B_pad
    elif B_pad <= 4096:
        TB = _round_up(-(-B_pad // 2), 16)
    else:
        TB = 2048
    B_pad = _round_up(B_pad, TB)

    # Single pad (no zeros + dynamic-update-slice); stream state in bf16.
    state_p = jnp.pad(state.astype(jnp.bfloat16),
                      ((0, B_pad - B), (0, DP - input_dim)))

    grid = (B_pad // TB,)
    flops = 2 * B_pad * (DP * 4 * N + 4 * N * N)
    bytes_accessed = int(state_p.size * 2 + ws.size * 2 + wh.size * 2
                         + b.size * 4 + B_pad * N * 2)

    out = pl.pallas_call(
        _make_kernel(N),
        out_shape=jax.ShapeDtypeStruct((B_pad, N), jnp.bfloat16),
        grid=grid,
        in_specs=[
            pl.BlockSpec((TB, DP), lambda i: (i, 0)),      # state batch tile
            pl.BlockSpec((DP, 4 * N), lambda i: (0, 0)),   # state-side weights (resident)
            pl.BlockSpec((4 * N, N), lambda i: (0, 0)),    # hidden-side weights (resident)
            pl.BlockSpec((8, N), lambda i: (0, 0)),        # packed biases (resident)
        ],
        out_specs=pl.BlockSpec((TB, N), lambda i: (i, 0)),
        compiler_params=pltpu.CompilerParams(
            dimension_semantics=("parallel",)),
        cost_estimate=pl.CostEstimate(
            flops=flops, transcendentals=0, bytes_accessed=bytes_accessed),
    )(state_p, ws, wh, b)

    return out[:B, :output_dim]


# --------------------- deterministic parameter init ----------------------- #
def xavier_uniform(key, out_features, in_features):
    # matches torch.nn.init.xavier_uniform_(gain=1) bounds
    bound = float(np.sqrt(6.0 / (in_features + out_features)))
    # PyTorch Linear weight is (out, in); we store the transpose (in, out).
    w_pt = jax.random.uniform(key, (out_features, in_features),
                              jnp.float32, -bound, bound)
    return w_pt.T


def init_raw_params(key, hidden_dim, input_dim, output_dim):
    k1, k2, k3, k4, k5 = jax.random.split(key, 5)
    return {
        # layer_1: Linear(input_dim, hidden_dim)
        "w1": xavier_uniform(k1, hidden_dim, input_dim),
        "b1": jnp.zeros((hidden_dim,), jnp.float32),
        # layers 2-4: Linear(input_dim + hidden_dim, hidden_dim); cat order is
        # [x, state] so the first hidden_dim input rows act on x.
        "w2": xavier_uniform(k2, hidden_dim, input_dim + hidden_dim),
        "b2": jnp.zeros((hidden_dim,), jnp.float32),
        "w3": xavier_uniform(k3, hidden_dim, input_dim + hidden_dim),
        "b3": jnp.zeros((hidden_dim,), jnp.float32),
        "w4": xavier_uniform(k4, hidden_dim, input_dim + hidden_dim),
        "b4": jnp.zeros((hidden_dim,), jnp.float32),
        # out_layer: Linear(hidden_dim, output_dim)
        "wo": xavier_uniform(k5, output_dim, hidden_dim),
        "bo": jnp.zeros((output_dim,), jnp.float32),
    }


def pack_params(raw, hidden_dim, input_dim, output_dim):
    """Pack weights into two lane-dense bf16 slabs + one f32 bias row block.

    ws: (DP, 4N)   columns = [W1 | Ws2 | Ws3 | Ws4]   (state-side parts)
    wh: (4N, N)    rows    = [Wh2; Wh3; Wh4; Wo]       (hidden-side parts)
    b : (8, N)     rows 0..4 = b1, b2, b3, b4, bo
    """
    DP = _round_up(input_dim, 16)                 # bf16 sublane aligned; NOT 128
    N = max(_round_up(hidden_dim, 128),
            _round_up(output_dim, 128))

    def pad2(w, rows, cols):
        r0, c0 = w.shape
        return jnp.pad(w, ((0, rows - r0), (0, cols - c0)))

    ws_pieces = [pad2(raw["w1"], DP, N)]
    for name in ("w2", "w3", "w4"):
        ws_pieces.append(pad2(raw[name][hidden_dim:], DP, N))   # state part
    ws = jnp.concatenate(ws_pieces, axis=1).astype(jnp.bfloat16)

    wh_pieces = []
    for name in ("w2", "w3", "w4"):
        wh_pieces.append(pad2(raw[name][:hidden_dim], N, N))    # hidden ("x") part
    wh_pieces.append(pad2(raw["wo"], N, N))                     # out_layer
    wh = jnp.concatenate(wh_pieces, axis=0).astype(jnp.bfloat16)

    b = jnp.zeros((8, N), jnp.float32)
    b = b.at[0, :hidden_dim].set(raw["b1"])
    b = b.at[1, :hidden_dim].set(raw["b2"])
    b = b.at[2, :hidden_dim].set(raw["b3"])
    b = b.at[3, :hidden_dim].set(raw["b4"])
    b = b.at[4, :output_dim].set(raw["bo"])

    return {"ws": ws, "wh": wh, "b": b,
            "dims": (input_dim, hidden_dim, output_dim, DP, N)}


# ---------------------------- pure-JAX references -------------------------- #
def d2rl_actor_ref_f32(state, raw):
    relu = lambda v: jnp.maximum(v, 0.0)
    x = relu(state @ raw["w1"] + raw["b1"])
    for wn, bn in (("w2", "b2"), ("w3", "b3"), ("w4", "b4")):
        x = relu(jnp.concatenate([x, state], -1) @ raw[wn] + raw[bn])
    return x @ raw["wo"] + raw["bo"]


def d2rl_actor_ref_bf16(state, raw, hidden_dim):
    """Mirrors the kernel's bf16-operand / f32-accumulate arithmetic."""
    bf = jnp.bfloat16
    relu = lambda v: jnp.maximum(v, 0.0)
    dot = lambda a, w: jnp.dot(a.astype(bf), w.astype(bf),
                               preferred_element_type=jnp.float32)
    x = relu(dot(state, raw["w1"]) + raw["b1"])
    for wn, bn in (("w2", "b2"), ("w3", "b3"), ("w4", "b4")):
        w = raw[wn]
        x = relu(dot(x, w[:hidden_dim]) + dot(state, w[hidden_dim:]) + raw[bn])
    return dot(x, raw["wo"]) + raw["bo"]


if __name__ == "__main__":
    # Small shapes consistent with the module (hidden_dim, input_dim, output_dim).
    batch, input_dim, hidden_dim, output_dim = 8, 48, 32, 16

    key = jax.random.PRNGKey(0)
    k_state, k_params = jax.random.split(key)
    state = jax.random.normal(k_state, (batch, input_dim), jnp.float32)
    raw = init_raw_params(k_params, hidden_dim, input_dim, output_dim)
    packed = pack_params(raw, hidden_dim, input_dim, output_dim)

    out = jax.block_until_ready(d2rl_actor_forward(state, packed))
    assert out.shape == (batch, output_dim)
    out_f32 = np.asarray(out.astype(jnp.float32))

    # Check against a reference using the same bf16-operand semantics
    # (tolerance covers the final bf16 output rounding).
    ref_bf16 = np.asarray(d2rl_actor_ref_bf16(state, raw, hidden_dim))
    np.testing.assert_allclose(out_f32, ref_bf16, rtol=1e-2, atol=1e-2)

    # Sanity check against the full-precision PyTorch-equivalent math.
    ref_f32 = np.asarray(d2rl_actor_ref_f32(state, raw))
    np.testing.assert_allclose(out_f32, ref_f32, rtol=5e-2, atol=5e-2)

    print("KERNEL_OK")
</pallas_src>

<mosaic_0001>
module attributes {stable_mosaic.version = 11 : i64} {
  func.func @kernel(%arg0: i32, %arg1: memref<16x48xbf16, #tpu.memory_space<vmem>>, %arg2: memref<48x512xbf16, #tpu.memory_space<vmem>>, %arg3: memref<512x128xbf16, #tpu.memory_space<vmem>>, %arg4: memref<8x128xf32, #tpu.memory_space<vmem>>, %arg5: memref<16x128xbf16, #tpu.memory_space<vmem>>) attributes {dimension_semantics = [#tpu.dimension_semantics<parallel>], iteration_bounds = array<i64: 1>, scalar_prefetch = 0 : i64, scratch_operands = 0 : i64, tpu.core_type = #tpu.core_type<tc>, window_params = [{transform_indices = @transform_0, window_bounds = array<i64: 16, 48>}, {pipeline_mode = #tpu.pipeline_mode<synchronous>, transform_indices = @transform_1, window_bounds = array<i64: 48, 512>}, {pipeline_mode = #tpu.pipeline_mode<synchronous>, transform_indices = @transform_2, window_bounds = array<i64: 512, 128>}, {pipeline_mode = #tpu.pipeline_mode<synchronous>, transform_indices = @transform_3, window_bounds = array<i64: 8, 128>}, {transform_indices = @transform_4, window_bounds = array<i64: 16, 128>}]} {
    %c0 = arith.constant 0 : index
    %c0_0 = arith.constant 0 : index
    %0 = vector.load %arg1[%c0, %c0_0] : memref<16x48xbf16, #tpu.memory_space<vmem>>, vector<16x48xbf16>
    %c0_1 = arith.constant 0 : index
    %c0_2 = arith.constant 0 : index
    %1 = vector.load %arg2[%c0_1, %c0_2] : memref<48x512xbf16, #tpu.memory_space<vmem>>, vector<48x512xbf16>
    %cst = arith.constant dense<0.000000e+00> : vector<16x512xf32>
    %2 = tpu.matmul %0, %1, %cst {dimension_numbers = #tpu.dot_dimension_numbers<[1], [0], [0], [1], [0, 0, 1, 1], [], []>} : vector<16x48xbf16>, vector<48x512xbf16>, vector<16x512xf32> -> vector<16x512xf32>
    %3 = vector.extract_strided_slice %2 {offsets = [0, 0], sizes = [16, 128], strides = [1, 1]} : vector<16x512xf32> to vector<16x128xf32>
    %c0_3 = arith.constant 0 : index
    %c0_4 = arith.constant 0 : index
    %4 = vector.load %arg4[%c0_3, %c0_4] : memref<8x128xf32, #tpu.memory_space<vmem>>, vector<1x128xf32>
    %5 = vector.broadcast %4 : vector<1x128xf32> to vector<16x128xf32>
    %6 = arith.addf %3, %5 : vector<16x128xf32>
    %cst_5 = arith.constant 0.000000e+00 : f32
    %7 = vector.broadcast %cst_5 : f32 to vector<16x128xf32>
    %8 = arith.maximumf %6, %7 : vector<16x128xf32>
    %9 = arith.truncf %8 : vector<16x128xf32> to vector<16x128xbf16>
    %c0_6 = arith.constant 0 : index
    %c0_7 = arith.constant 0 : index
    %10 = vector.load %arg3[%c0_6, %c0_7] : memref<512x128xbf16, #tpu.memory_space<vmem>>, vector<128x128xbf16>
    %cst_8 = arith.constant dense<0.000000e+00> : vector<16x128xf32>
    %11 = tpu.matmul %9, %10, %cst_8 {dimension_numbers = #tpu.dot_dimension_numbers<[1], [0], [0], [1], [0, 0, 1, 1], [], []>} : vector<16x128xbf16>, vector<128x128xbf16>, vector<16x128xf32> -> vector<16x128xf32>
    %12 = vector.extract_strided_slice %2 {offsets = [0, 128], sizes = [16, 128], strides = [1, 1]} : vector<16x512xf32> to vector<16x128xf32>
    %13 = arith.addf %11, %12 : vector<16x128xf32>
    %c1 = arith.constant 1 : index
    %c0_9 = arith.constant 0 : index
    %14 = vector.load %arg4[%c1, %c0_9] : memref<8x128xf32, #tpu.memory_space<vmem>>, vector<1x128xf32>
    %15 = vector.broadcast %14 : vector<1x128xf32> to vector<16x128xf32>
    %16 = arith.addf %13, %15 : vector<16x128xf32>
    %cst_10 = arith.constant 0.000000e+00 : f32
    %17 = vector.broadcast %cst_10 : f32 to vector<16x128xf32>
    %18 = arith.maximumf %16, %17 : vector<16x128xf32>
    %19 = arith.truncf %18 : vector<16x128xf32> to vector<16x128xbf16>
    %c128 = arith.constant 128 : index
    %c0_11 = arith.constant 0 : index
    %20 = vector.load %arg3[%c128, %c0_11] : memref<512x128xbf16, #tpu.memory_space<vmem>>, vector<128x128xbf16>
    %cst_12 = arith.constant dense<0.000000e+00> : vector<16x128xf32>
    %21 = tpu.matmul %19, %20, %cst_12 {dimension_numbers = #tpu.dot_dimension_numbers<[1], [0], [0], [1], [0, 0, 1, 1], [], []>} : vector<16x128xbf16>, vector<128x128xbf16>, vector<16x128xf32> -> vector<16x128xf32>
    %22 = vector.extract_strided_slice %2 {offsets = [0, 256], sizes = [16, 128], strides = [1, 1]} : vector<16x512xf32> to vector<16x128xf32>
    %23 = arith.addf %21, %22 : vector<16x128xf32>
    %c2 = arith.constant 2 : index
    %c0_13 = arith.constant 0 : index
    %24 = vector.load %arg4[%c2, %c0_13] : memref<8x128xf32, #tpu.memory_space<vmem>>, vector<1x128xf32>
    %25 = vector.broadcast %24 : vector<1x128xf32> to vector<16x128xf32>
    %26 = arith.addf %23, %25 : vector<16x128xf32>
    %cst_14 = arith.constant 0.000000e+00 : f32
    %27 = vector.broadcast %cst_14 : f32 to vector<16x128xf32>
    %28 = arith.maximumf %26, %27 : vector<16x128xf32>
    %29 = arith.truncf %28 : vector<16x128xf32> to vector<16x128xbf16>
    %c256 = arith.constant 256 : index
    %c0_15 = arith.constant 0 : index
    %30 = vector.load %arg3[%c256, %c0_15] : memref<512x128xbf16, #tpu.memory_space<vmem>>, vector<128x128xbf16>
    %cst_16 = arith.constant dense<0.000000e+00> : vector<16x128xf32>
    %31 = tpu.matmul %29, %30, %cst_16 {dimension_numbers = #tpu.dot_dimension_numbers<[1], [0], [0], [1], [0, 0, 1, 1], [], []>} : vector<16x128xbf16>, vector<128x128xbf16>, vector<16x128xf32> -> vector<16x128xf32>
    %32 = vector.extract_strided_slice %2 {offsets = [0, 384], sizes = [16, 128], strides = [1, 1]} : vector<16x512xf32> to vector<16x128xf32>
    %33 = arith.addf %31, %32 : vector<16x128xf32>
    %c3 = arith.constant 3 : index
    %c0_17 = arith.constant 0 : index
    %34 = vector.load %arg4[%c3, %c0_17] : memref<8x128xf32, #tpu.memory_space<vmem>>, vector<1x128xf32>
    %35 = vector.broadcast %34 : vector<1x128xf32> to vector<16x128xf32>
    %36 = arith.addf %33, %35 : vector<16x128xf32>
    %cst_18 = arith.constant 0.000000e+00 : f32
    %37 = vector.broadcast %cst_18 : f32 to vector<16x128xf32>
    %38 = arith.maximumf %36, %37 : vector<16x128xf32>
    %39 = arith.truncf %38 : vector<16x128xf32> to vector<16x128xbf16>
    %c384 = arith.constant 384 : index
    %c0_19 = arith.constant 0 : index
    %40 = vector.load %arg3[%c384, %c0_19] : memref<512x128xbf16, #tpu.memory_space<vmem>>, vector<128x128xbf16>
    %cst_20 = arith.constant dense<0.000000e+00> : vector<16x128xf32>
    %41 = tpu.matmul %39, %40, %cst_20 {dimension_numbers = #tpu.dot_dimension_numbers<[1], [0], [0], [1], [0, 0, 1, 1], [], []>} : vector<16x128xbf16>, vector<128x128xbf16>, vector<16x128xf32> -> vector<16x128xf32>
    %c4 = arith.constant 4 : index
    %c0_21 = arith.constant 0 : index
    %42 = vector.load %arg4[%c4, %c0_21] : memref<8x128xf32, #tpu.memory_space<vmem>>, vector<1x128xf32>
    %43 = vector.broadcast %42 : vector<1x128xf32> to vector<16x128xf32>
    %44 = arith.addf %41, %43 : vector<16x128xf32>
    %45 = arith.truncf %44 : vector<16x128xf32> to vector<16x128xbf16>
    %c0_22 = arith.constant 0 : index
    %c0_23 = arith.constant 0 : index
    %46 = vector.load %arg5[%c0_22, %c0_23] : memref<16x128xbf16, #tpu.memory_space<vmem>>, vector<16x128xbf16>
    tpu.vector_store %arg5[%c0_22, %c0_23], %45 {strides = array<i32>} : memref<16x128xbf16, #tpu.memory_space<vmem>>, vector<16x128xbf16>,
    return
  }
  func.func @transform_0(%arg0: i32) -> (i32, i32) {
    %c0_i32 = arith.constant 0 : i32
    %c0_i32_0 = arith.constant 0 : i32
    return %arg0, %c0_i32 : i32, i32
  }
  func.func @transform_1(%arg0: i32) -> (i32, i32) {
    %c0_i32 = arith.constant 0 : i32
    %c0_i32_0 = arith.constant 0 : i32
    %c0_i32_1 = arith.constant 0 : i32
    return %c0_i32, %c0_i32_0 : i32, i32
  }
  func.func @transform_2(%arg0: i32) -> (i32, i32) {
    %c0_i32 = arith.constant 0 : i32
    %c0_i32_0 = arith.constant 0 : i32
    %c0_i32_1 = arith.constant 0 : i32
    return %c0_i32, %c0_i32_0 : i32, i32
  }
  func.func @transform_3(%arg0: i32) -> (i32, i32) {
    %c0_i32 = arith.constant 0 : i32
    %c0_i32_0 = arith.constant 0 : i32
    %c0_i32_1 = arith.constant 0 : i32
    return %c0_i32, %c0_i32_0 : i32, i32
  }
  func.func @transform_4(%arg0: i32) -> (i32, i32) {
    %c0_i32 = arith.constant 0 : i32
    %c0_i32_0 = arith.constant 0 : i32
    return %arg0, %c0_i32 : i32, i32
  }
}

</mosaic_0001>

<bundles_post_ra>
// kernel: tpu_custom_call.1
= control target key start
LH: loop header
LB: loop body
LE: loop exit
PB: predicated region body
PF: predicated region fallthrough
CT: control target
= control target key end

     0   :  { %9 = vsyncpa [#allocation3], 0  ;;  %s1186_s0 = inlined_call_operand.hbm [shape: bf16[16,48], index: 0, kind: input, shape index: {}]   ;;  %s1187_s1 = inlined_call_operand.hbm [shape: bf16[48,512], index: 1, kind: input, shape index: {}]   ;;  %s1188_s2 = inlined_call_operand.hbm [shape: bf16[512,128], index: 2, kind: input, shape index: {}]   ;;  %s1189_s3 = inlined_call_operand.hbm [shape: f32[8,128], index: 3, kind: input, shape index: {}]   ;;  %s1190_s4 = inlined_call_operand.hbm [shape: bf16[16,128], index: 4, kind: output, shape index: {}]  }
   0x1   :  { %10 = vsyncpa [#allocation6], 0 }
   0x2   :  { %11 = vsyncpa [#allocation9], 0 }
   0x3   :  { %12 = vsyncpa [#allocation4], 0  ;;  %s1083_s15 = smov [#allocation5]  }
   0x4   :  { %s30_s16 = sshll.u32 %s1083_s15, 4  ;;  %s31_s16 = int_to_ptr.vmem [resolvable:$true] %s30_s16 }
   0x5   :  { %s983_s17 = scalar_lea.vmem %s31_s16, 1536  ;;  %p988_p1 = scmp.lt.s32.totalorder %s31_s16, %s31_s16 }
   0x6   :  { %p984_p0 = scmp.ne.s32.totalorder %s31_s16, %s983_s17  ;;  %p989_p2 = scmp.lt.s32.totalorder %s983_s17, %s983_s17 }
   0x8   :  { %p990_p3 = por %p989_p2, %p988_p1 }
   0xa   :  { %p991_p4 = pnand %p990_p3, %p984_p0 }
   0xc   :  { %994 = shalt.err (!%p991_p4)
}
   0xd   :  { %s1084_s18 = smov 256   ;;  %s1085_s19 = smov 16  }
   0xe   :  { %36 = dma.hbm_to_vmem [thread:$0]  %s1187_s1, 1536, %s31_s16, [#allocation6], %s1084_s18, %s1084_s18, %s1085_s19  }
   0xf   :  { %s1086_s22 = smov [#allocation2]  }
  0x10   :  { %s18_s23 = sshll.u32 %s1086_s22, 4  ;;  %s19_s23 = int_to_ptr.vmem [resolvable:$true] %s18_s23 }
  0x11   :  { %s1003_s24 = scalar_lea.vmem %s19_s23, 128  ;;  %p1008_p6 = scmp.lt.s32.totalorder %s19_s23, %s19_s23 }
  0x12   :  { %p1004_p5 = scmp.ne.s32.totalorder %s19_s23, %s1003_s24  ;;  %p1009_p7 = scmp.lt.s32.totalorder %s1003_s24, %s1003_s24 }
  0x14   :  { %p1010_p8 = por %p1009_p7, %p1008_p6 }
  0x16   :  { %p1011_p9 = pnand %p1010_p8, %p1004_p5 }
  0x18   :  { %1014 = shalt.err (!%p1011_p9)
}
  0x19   :  { %s1087_s25 = smov 64   ;;  %s1088_s26 = smov 4  }
  0x1a   :  { %24 = dma.hbm_to_vmem [thread:$0]  %s1186_s0, 128, %s19_s23, [#allocation3], %s1087_s25, %s1087_s25, %s1088_s26  }
  0x1b   :  { %s1089_s1 = smov [#allocation7]   ;;  %s1090_s30 = smov [#allocation8]  }
  0x1c   :  { %s42_s29 = sshll.u32 %s1089_s1, 4  ;;  %s55_s5 = sshll.u32 %s1090_s30, 4  ;;  %s43_s29 = int_to_ptr.vmem [resolvable:$true] %s42_s29  ;;  %s56_s5 = int_to_ptr.vmem [resolvable:$true] %s55_s5 }
  0x1d   :  { %s1023_s6 = scalar_lea.vmem %s43_s29, 4096  ;;  %p1028_p11 = scmp.lt.s32.totalorder %s43_s29, %s43_s29 }
  0x1e   :  { %p1024_p10 = scmp.ne.s32.totalorder %s43_s29, %s1023_s6  ;;  %p1029_p12 = scmp.lt.s32.totalorder %s1023_s6, %s1023_s6 }
  0x20   :  { %p1030_p13 = por %p1029_p12, %p1028_p11 }
  0x22   :  { %p1031_p0 = pnand %p1030_p13, %p1024_p10 }
  0x24   :  { %1034 = shalt.err (!%p1031_p0)
}
  0x25   :  { %48 = dma.hbm_to_vmem [thread:$0]  %s1188_s2, 4096, %s43_s29, [#allocation6], %s1087_s25, %s1087_s25, %s1088_s26  }
  0x26   :  { %s1043_s0 = scalar_lea.vmem %s56_s5, 128  ;;  %p1048_p2 = scmp.lt.s32.totalorder %s56_s5, %s56_s5 }
  0x27   :  { %p1044_p1 = scmp.ne.s32.totalorder %s56_s5, %s1043_s0  ;;  %p1049_p3 = scmp.lt.s32.totalorder %s1043_s0, %s1043_s0 }
  0x29   :  { %p1050_p4 = por %p1049_p3, %p1048_p2 }
  0x2b   :  { %p1051_p5 = pnand %p1050_p4, %p1044_p1 }
  0x2d   :  { %1054 = shalt.err (!%p1051_p5)
}
  0x2e   :  { %58 = dma.hbm_to_vmem [thread:$0]  %s1189_s3, 128, %s56_s5, [#allocation9]  }
  0x2f   :  { %1075 = dma.done.wait [#allocation3], 128  }
  0x30   :  { %1076 = vsyncadd [#allocation3], 4294967168 }
  0x31   :  { %1077 = dma.done.wait [#allocation6], 5632  }
  0x32   :  { %1078 = vsyncadd [#allocation6], 4294961664 }
  0x33   :  { %1079 = dma.done.wait [#allocation9], 128  }
  0x34   :  { %1080 = vsyncadd [#allocation9], 4294967168  ;;  %v1091_v0 = vmov 0   ;;  %v924_v1 = vld [vmem:[#allocation5 + $0x44] ss:$16 sps:$4 sm:$0xff]   ;;  %v933_v7 = vld [vmem:[#allocation2] sm:$0xff]  }
  0x35   :  { %187 = vmatprep.mubr.bf16.mxu0 %v1091_v0  ;;  %230 = vmatprep.mubr.bf16.mxu1 %v1091_v0  ;;  %v926_v2 = vld [vmem:[#allocation5 + $0x40] ss:$16 sps:$4 sm:$0xff]   ;;  %v927_v3 = vld [vmem:[#allocation5 + $0x24] ss:$16 sps:$4 sm:$0xff]   ;;  %vm151_vm0 = vcmask 392192   ;;  %v934_v8 = vld [vmem:[#allocation7 + $0x38] sm:$0xff]  }
  0x36   :  { %165 = vmatprep.subr.bf16.mxu0 %v924_v1  ;;  %v929_v4 = vld [vmem:[#allocation5 + $0x20] ss:$16 sps:$4 sm:$0xff]   ;;  %v930_v5 = vld [vmem:[#allocation5 + $0x4] ss:$16 sps:$4 sm:$0xff]   ;;  %v1092_v9 = vmov 0.0   ;;  %v936_v11 = vld [vmem:[#allocation7 + $0x28] sm:$0xff]  }
  0x37   :  { %166 = vmatpush1.bf16.msra.mxu0 %v926_v2  ;;  %v932_v6 = vld [vmem:[#allocation5] ss:$16 sps:$4 sm:$0xff]   ;;  %v938_v13 = vld [vmem:[#allocation7 + $0x18] sm:$0xff]   ;;  %v940_v15 = vld [vmem:[#allocation7 + $0x8] sm:$0xff]   ;;  %vm1093_vm1 = vmmov 0   ;;  %s1094_s2 = smov [#allocation10]  }
  0x38   :  { %167 = vmatprep.subr.bf16.mxu0 %v927_v3  ;;  %v935_v10 = vld [vmem:[#allocation7 + $0x30] sm:$0xff]   ;;  %v937_v12 = vld [vmem:[#allocation7 + $0x20] sm:$0xff]   ;;  %v942_v17 = vld [vmem:[#allocation5 + $0x4c] ss:$16 sps:$4 sm:$0xff]   ;;  %s721_s3 = sshll.u32 %s1094_s2, 4  ;;  %s722_s3 = int_to_ptr.vmem [resolvable:$true] %s721_s3 }
  0x39   :  { %v939_v14 = vld [vmem:[#allocation7 + $0x10] sm:$0xff]   ;;  %v941_v16 = vld [vmem:[#allocation7] sm:$0xff]   ;;  %v944_v18 = vld [vmem:[#allocation5 + $0x48] ss:$16 sps:$4 sm:$0xff]   ;;  %208 = vmatprep.subr.bf16.mxu1 %v942_v17  ;;  %s1055_s11 = scalar_lea.vmem %s722_s3, 128  ;;  %p1060_p7 = scmp.lt.s32.totalorder %s722_s3, %s722_s3 }
  0x3a   :  { %v945_v19 = vld [vmem:[#allocation5 + $0x2c] ss:$16 sps:$4 sm:$0xff]   ;;  %209 = vmatpush1.bf16.msra.mxu1 %v944_v18  ;;  %v947_v20 = vld [vmem:[#allocation5 + $0x28] ss:$16 sps:$4 sm:$0xff]   ;;  %v952_v24 = vld [vmem:[#allocation7 + $0x70] sm:$0xff]   ;;  %p1056_p6 = scmp.ne.s32.totalorder %s722_s3, %s1055_s11  ;;  %p1061_p8 = scmp.lt.s32.totalorder %s1055_s11, %s1055_s11 }
  0x3b   :  { %168 = vmatpush1.bf16.msra.mxu0 %v929_v4  ;;  %210 = vmatprep.subr.bf16.mxu1 %v945_v19  ;;  %v948_v21 = vld [vmem:[#allocation5 + $0xc] ss:$16 sps:$4 sm:$0xff]   ;;  %v950_v22 = vld [vmem:[#allocation5 + $0x8] ss:$16 sps:$4 sm:$0xff]   ;;  %v954_v26 = vld [vmem:[#allocation7 + $0x60] sm:$0xff]  }
  0x3c   :  { %169 = vmatprep.subr.bf16.mxu0 %v930_v5  ;;  %v951_v23 = vld [vmem:[#allocation7 + $0x78] sm:$0xff]   ;;  %v953_v25 = vld [vmem:[#allocation7 + $0x68] sm:$0xff]   ;;  %v750_v29 = vld [vmem:[#allocation8] ss:$0 sm:$0xff]  ;;  %p1062_p9 = por %p1061_p8, %p1060_p7 }
  0x3d   :  { %v955_v27 = vld [vmem:[#allocation7 + $0x58] sm:$0xff]   ;;  %v956_v37 = vld [vmem:[#allocation7 + $0x50] sm:$0xff]   ;;  %v957_v38 = vld [vmem:[#allocation7 + $0x48] sm:$0xff]  }
  0x3e   :  { %211 = vmatpush1.bf16.msra.mxu1 %v947_v20  ;;  %v958_v39 = vld [vmem:[#allocation7 + $0x40] sm:$0xff]   ;;  %v959_v40 = vld [vmem:[#allocation7 + $0xb8] sm:$0xff]   ;;  %v960_v41 = vld [vmem:[#allocation7 + $0xb0] sm:$0xff]   ;;  %p1063_p10 = pnand %p1062_p9, %p1056_p6 }
  0x3f   :  { %170 = vmatpush1.bf16.msra.mxu0 %v932_v6  ;;  %212 = vmatprep.subr.bf16.mxu1 %v948_v21  ;;  %v961_v42 = vld [vmem:[#allocation7 + $0xa8] sm:$0xff]   ;;  %v962_v43 = vld [vmem:[#allocation7 + $0xa0] sm:$0xff]   ;;  %v963_v44 = vld [vmem:[#allocation7 + $0x98] sm:$0xff]  }
  0x40   :  { %832 = vmatprep.subr.bf16.mxu0 %v1092_v9  ;;  %v759_v48 = vld [vmem:[#allocation8 + $0x1] ss:$0 sm:$0xff]  ;;  %v964_v58 = vld [vmem:[#allocation7 + $0x90] sm:$0xff]   ;;  %v965_v59 = vld [vmem:[#allocation7 + $0x88] sm:$0xff]  }
  0x41   :  { %v966_v60 = vld [vmem:[#allocation7 + $0x80] sm:$0xff]   ;;  %v967_v61 = vld [vmem:[#allocation7 + $0xf8] sm:$0xff]   ;;  %v968_v62 = vld [vmem:[#allocation7 + $0xf0] sm:$0xff]  }
  0x42   :  { %748 = vmatmul.mubr.msk.bf16.vlgmr.msra.gmra.mxu0 %vm151_vm0, %v933_v7  ;;  %213 = vmatpush1.bf16.msra.mxu1 %v950_v22  ;;  %v969_v63 = vld [vmem:[#allocation7 + $0xe8] sm:$0xff]   ;;  %v970_v0 = vld [vmem:[#allocation7 + $0xe0] sm:$0xff]   ;;  %v971_v1 = vld [vmem:[#allocation7 + $0xd8] sm:$0xff]  }
  0x43   :  { %833 = vmatpush3.bf16.msra.mxu0 %v934_v8  ;;  %848 = vmatprep.mubr.msk.bf16.mxu0 %vm1093_vm1, %v1092_v9  ;;  %v768_v8 = vld [vmem:[#allocation8 + $0x2] ss:$0 sm:$0xff]  ;;  %v972_v19 = vld [vmem:[#allocation7 + $0xd0] sm:$0xff]   ;;  %v973_v20 = vld [vmem:[#allocation7 + $0xc8] sm:$0xff]  }
  0x44   :  { %834 = vmatprep.subr.bf16.mxu0 %v1092_v9  ;;  %852 = vmatprep.subr.bf16.mxu1 %v1092_v9  ;;  %v974_v21 = vld [vmem:[#allocation7 + $0xc0] sm:$0xff]  }
  0x45   :  { %749 = vmatmul.mubr.msk.bf16.vlgmr.msra.gmra.mxu1 %vm151_vm0, %v933_v7 }
  0x46   :  { %853 = vmatpush3.bf16.msra.mxu1 %v951_v23  ;;  %868 = vmatprep.mubr.msk.bf16.mxu1 %vm1093_vm1, %v1092_v9 }
  0x47   :  { %835 = vmatpush3.bf16.msra.mxu0 %v935_v10  ;;  %854 = vmatprep.subr.bf16.mxu1 %v1092_v9 }
  0x48   :  { %836 = vmatprep.subr.bf16.mxu0 %v1092_v9 }
  0x4a   :  { %855 = vmatpush3.bf16.msra.mxu1 %v952_v24  ;;  %v777_v24 = vld [vmem:[#allocation8 + $0x3] ss:$0 sm:$0xff] }
  0x4b   :  { %837 = vmatpush3.bf16.msra.mxu0 %v936_v11  ;;  %856 = vmatprep.subr.bf16.mxu1 %v1092_v9 }
  0x4c   :  { %838 = vmatprep.subr.bf16.mxu0 %v1092_v9 }
  0x4e   :  { %857 = vmatpush3.bf16.msra.mxu1 %v953_v25 }
  0x4f   :  { %839 = vmatpush3.bf16.msra.mxu0 %v937_v12  ;;  %858 = vmatprep.subr.bf16.mxu1 %v1092_v9 }
  0x50   :  { %840 = vmatprep.subr.bf16.mxu0 %v1092_v9 }
  0x52   :  { %859 = vmatpush3.bf16.msra.mxu1 %v954_v26 }
  0x53   :  { %841 = vmatpush3.bf16.msra.mxu0 %v938_v13  ;;  %860 = vmatprep.subr.bf16.mxu1 %v1092_v9 }
  0x54   :  { %842 = vmatprep.subr.bf16.mxu0 %v1092_v9 }
  0x56   :  { %861 = vmatpush3.bf16.msra.mxu1 %v955_v27 }
  0x57   :  { %843 = vmatpush3.bf16.msra.mxu0 %v939_v14  ;;  %862 = vmatprep.subr.bf16.mxu1 %v1092_v9 }
  0x58   :  { %844 = vmatprep.subr.bf16.mxu0 %v1092_v9 }
  0x5a   :  { %863 = vmatpush3.bf16.msra.mxu1 %v956_v37 }
  0x5b   :  { %845 = vmatpush3.bf16.msra.mxu0 %v940_v15  ;;  %864 = vmatprep.subr.bf16.mxu1 %v1092_v9 }
  0x5c   :  { %846 = vmatprep.subr.bf16.mxu0 %v1092_v9 }
  0x5e   :  { %865 = vmatpush3.bf16.msra.mxu1 %v957_v38 }
  0x5f   :  { %847 = vmatpush3.bf16.msra.mxu0 %v941_v16  ;;  %866 = vmatprep.subr.bf16.mxu1 %v1092_v9 }
  0x60   :  { %872 = vmatprep.subr.bf16.mxu0 %v1092_v9 }
  0x62   :  { %867 = vmatpush3.bf16.msra.mxu1 %v958_v39 }
  0x63   :  { %892 = vmatprep.subr.bf16.mxu1 %v1092_v9 }
 0x102   :  { %v189_v28 = vpop.f32.mrf.mxu0 }
 0x103   :  { %v246_v31 = vadd.f32 %v750_v29, %v189_v28 }
 0x104   :  { %v191_v30 = vpop.f32.mrf.mxu0 }
 0x105   :  { %v248_v34 = vmax.f32 %v246_v31, 0.0  ;;  %v232_v2 = vpop.f32.mrf.mxu1 }
 0x106   :  { %v193_v32 = vpop.f32.mrf.mxu0 }
 0x107   :  { %v247_v33 = vadd.f32 %v750_v29, %v193_v32  ;;  %v234_v3 = vpop.f32.mrf.mxu1 }
 0x108   :  { %v195_v45 = vpop.f32.mrf.mxu0 }
 0x109   :  { %v249_v35 = vmax.f32 %v247_v33, 0.0  ;;  %v236_v4 = vpop.f32.mrf.mxu1 }
 0x10b   :  { %v250_v36 = vpack.c.bf16 %v249_v35, %v248_v34  ;;  %v238_v5 = vpop.f32.mrf.mxu1  ;;  %v778_v35 = vld [vmem:[#allocation8 + $0x4] ss:$0 sm:$0xff] }
 0x10d   :  { %849 = vmatmul.mubr.bf16.vlgmr.msra.gmra.mxu0 %v250_v36 }
 0x10e   :  { %888 = vmatprep.mubr.msk.bf16.mxu0 %vm1093_vm1, %v1092_v9  ;;  %873 = vmatpush3.bf16.msra.mxu0 %v959_v40 }
 0x10f   :  { %874 = vmatprep.subr.bf16.mxu0 %v1092_v9 }
 0x112   :  { %875 = vmatpush3.bf16.msra.mxu0 %v960_v41 }
 0x113   :  { %876 = vmatprep.subr.bf16.mxu0 %v1092_v9 }
 0x116   :  { %877 = vmatpush3.bf16.msra.mxu0 %v961_v42 }
 0x117   :  { %878 = vmatprep.subr.bf16.mxu0 %v1092_v9 }
 0x11a   :  { %879 = vmatpush3.bf16.msra.mxu0 %v962_v43 }
 0x11b   :  { %880 = vmatprep.subr.bf16.mxu0 %v1092_v9 }
 0x11e   :  { %881 = vmatpush3.bf16.msra.mxu0 %v963_v44 }
 0x11f   :  { %882 = vmatprep.subr.bf16.mxu0 %v1092_v9 }
 0x122   :  { %883 = vmatpush3.bf16.msra.mxu0 %v964_v58 }
 0x123   :  { %884 = vmatprep.subr.bf16.mxu0 %v1092_v9 }
 0x126   :  { %885 = vmatpush3.bf16.msra.mxu0 %v965_v59 }
 0x127   :  { %886 = vmatprep.subr.bf16.mxu0 %v1092_v9 }
 0x12a   :  { %887 = vmatpush3.bf16.msra.mxu0 %v966_v60 }
 0x1cd   :  { %v349_v46 = vpop.f32.mrf.mxu0 }
 0x1ce   :  { %v350_v47 = vadd.f32 %v349_v46, %v191_v30 }
 0x1cf   :  { %v850_v49 = vpop.f32.mrf.mxu0 }
 0x1d0   :  { %v361_v51 = vadd.f32 %v759_v48, %v350_v47 }
 0x1d1   :  { %v352_v50 = vpop.f32.mrf.mxu0 }
 0x1d2   :  { %v353_v52 = vadd.f32 %v352_v50, %v195_v45  ;;  %v363_v55 = vmax.f32 %v361_v51, 0.0 }
 0x1d3   :  { %v851_v53 = vpop.f32.mrf.mxu0 }
 0x1d4   :  { %v362_v54 = vadd.f32 %v759_v48, %v353_v52 }
 0x1d6   :  { %v364_v56 = vmax.f32 %v362_v54, 0.0 }
 0x1d8   :  { %v365_v57 = vpack.c.bf16 %v364_v56, %v363_v55 }
 0x1da   :  { %869 = vmatmul.mubr.bf16.vlgmr.msra.gmra.mxu1 %v365_v57 }
 0x1db   :  { %908 = vmatprep.mubr.msk.bf16.mxu1 %vm1093_vm1, %v1092_v9  ;;  %893 = vmatpush3.bf16.msra.mxu1 %v967_v61 }
 0x1dc   :  { %894 = vmatprep.subr.bf16.mxu1 %v1092_v9 }
 0x1df   :  { %895 = vmatpush3.bf16.msra.mxu1 %v968_v62 }
 0x1e0   :  { %896 = vmatprep.subr.bf16.mxu1 %v1092_v9 }
 0x1e3   :  { %897 = vmatpush3.bf16.msra.mxu1 %v969_v63 }
 0x1e4   :  { %898 = vmatprep.subr.bf16.mxu1 %v1092_v9 }
 0x1e7   :  { %899 = vmatpush3.bf16.msra.mxu1 %v970_v0 }
 0x1e8   :  { %900 = vmatprep.subr.bf16.mxu1 %v1092_v9 }
 0x1eb   :  { %901 = vmatpush3.bf16.msra.mxu1 %v971_v1 }
 0x1ec   :  { %902 = vmatprep.subr.bf16.mxu1 %v1092_v9 }
 0x1ef   :  { %903 = vmatpush3.bf16.msra.mxu1 %v972_v19 }
 0x1f0   :  { %904 = vmatprep.subr.bf16.mxu1 %v1092_v9 }
 0x1f3   :  { %905 = vmatpush3.bf16.msra.mxu1 %v973_v20 }
 0x1f4   :  { %906 = vmatprep.subr.bf16.mxu1 %v1092_v9 }
 0x1f7   :  { %907 = vmatpush3.bf16.msra.mxu1 %v974_v21 }
 0x29a   :  { %v464_v6 = vpop.f32.mrf.mxu1 }
 0x29b   :  { %v465_v7 = vadd.f32 %v464_v6, %v232_v2 }
 0x29c   :  { %v870_v10 = vpop.f32.mrf.mxu1 }
 0x29d   :  { %v476_v12 = vadd.f32 %v768_v8, %v465_v7 }
 0x29e   :  { %v467_v11 = vpop.f32.mrf.mxu1 }
 0x29f   :  { %v468_v13 = vadd.f32 %v467_v11, %v236_v4  ;;  %v478_v16 = vmax.f32 %v476_v12, 0.0 }
 0x2a0   :  { %v871_v14 = vpop.f32.mrf.mxu1 }
 0x2a1   :  { %v477_v15 = vadd.f32 %v768_v8, %v468_v13 }
 0x2a3   :  { %v479_v17 = vmax.f32 %v477_v15, 0.0 }
 0x2a5   :  { %v480_v18 = vpack.c.bf16 %v479_v17, %v478_v16 }
 0x2a7   :  { %889 = vmatmul.mubr.bf16.vlgmr.msra.gmra.mxu0 %v480_v18 }
 0x367   :  { %v579_v22 = vpop.f32.mrf.mxu0 }
 0x368   :  { %v580_v23 = vadd.f32 %v579_v22, %v234_v3 }
 0x369   :  { %v890_v25 = vpop.f32.mrf.mxu0 }
 0x36a   :  { %v591_v27 = vadd.f32 %v777_v24, %v580_v23 }
 0x36b   :  { %v582_v26 = vpop.f32.mrf.mxu0 }
 0x36c   :  { %v583_v28 = vadd.f32 %v582_v26, %v238_v5  ;;  %v593_v31 = vmax.f32 %v591_v27, 0.0 }
 0x36d   :  { %v891_v29 = vpop.f32.mrf.mxu0 }
 0x36e   :  { %v592_v30 = vadd.f32 %v777_v24, %v583_v28 }
 0x370   :  { %v594_v32 = vmax.f32 %v592_v30, 0.0 }
 0x372   :  { %v595_v33 = vpack.c.bf16 %v594_v32, %v593_v31 }
 0x374   :  { %909 = vmatmul.mubr.bf16.vlgmr.msra.gmra.mxu1 %v595_v33 }
 0x434   :  { %v699_v34 = vpop.f32.mrf.mxu1 }
 0x435   :  { %v700_v9 = vadd.f32 %v778_v35, %v699_v34 }
 0x436   :  { %v910_v36 = vpop.f32.mrf.mxu1 }
 0x438   :  { %v702_v37 = vpop.f32.mrf.mxu1 }
 0x439   :  { %v703_v38 = vadd.f32 %v778_v35, %v702_v37 }
 0x43a   :  { %v911_v39 = vpop.f32.mrf.mxu1 }
 0x43b   :  { %v794_v40 = vpack.c.bf16 %v703_v38, %v700_v9 }
 0x43d   :  { %795 = vst [vmem:[#allocation10] sm:$0xff] %v794_v40  }
 0x43e   :  { %1066 = shalt.err (!%p1063_p10)
}
 0x43f   :  { %727 = dma.vmem_to_hbm [thread:$0]  %s722_s3, 128, %s1190_s4, [#allocation4], %s1087_s25, %s1087_s25, %s1088_s26  }
 0x440   :  { %1081 = dma.done.wait [#allocation4], 128  }
 0x441   :  { %1082 = vsyncadd [#allocation4], 4294967168 }
 0x442   :  { %731 = vsyncpa [#allocation3], 1 }
 0x443   :  { %732 = vsyncpa [#allocation6], 1 }
 0x444   :  { %733 = vsyncpa [#allocation9], 1 }
 0x445   :  { %734 = vsyncpa [#allocation4], 1 }

</bundles_post_ra>
